<compile_context>
chip_gen: v5e
topology: v5e:2x2
jax: 0.10.0
libtpu: 0.0.40
codegen_flags: <defaults>
</compile_context>

<pallas_src>
import functools

import jax
import jax.numpy as jnp
from jax.experimental import pallas as pl
from jax.experimental.pallas import tpu as pltpu


def _round_up(x, m):
    return (x + m - 1) // m * m


def _bert_output_kernel(h_ref, res_ref, w_ref, b_ref, g_ref, beta_ref, o_ref, *, eps):
    # h_ref   : (tm, I)   intermediate activations tile (native dtype)
    # res_ref : (tm, H)   residual (input_tensor) tile (native dtype)
    # w_ref   : (I,  H)   dense weight, in x out layout (bf16, resident)
    # b_ref   : (1,  H)   dense bias      (f32, resident)
    # g_ref   : (1,  H)   LayerNorm gamma (f32, resident)
    # beta_ref: (1,  H)   LayerNorm beta  (f32, resident)
    # o_ref   : (tm, H)   output tile

    # Dense on the MXU: cast the activation tile to the weight's (bf16) dtype so the
    # MXU runs at native rate; accumulate in f32.
    h = h_ref[...]
    w = w_ref[...]
    if h.dtype != w.dtype:
        h = h.astype(w.dtype)
    y = jnp.dot(h, w, preferred_element_type=jnp.float32)
    y = y + b_ref[...]

    # Dropout (eval mode) = identity, then residual add in f32.
    y = y + res_ref[...].astype(jnp.float32)

    # LayerNorm over the hidden axis (biased variance, eps=1e-12 -> BertLayerNorm).
    mean = jnp.mean(y, axis=-1, keepdims=True)
    centered = y - mean
    var = jnp.mean(centered * centered, axis=-1, keepdims=True)
    y_hat = centered * jax.lax.rsqrt(var + eps)
    out = y_hat * g_ref[...] + beta_ref[...]

    o_ref[...] = out.astype(o_ref.dtype)


def bert_output(hidden_states, input_tensor, w, b, gamma, beta, *,
                eps=1e-12, tm=1024, mxu_dtype=jnp.bfloat16):
    """hidden_states: (..., I), input_tensor: (..., H), w: (I, H). Returns (..., H)."""
    lead_shape = hidden_states.shape[:-1]
    I = hidden_states.shape[-1]
    H = input_tensor.shape[-1]
    assert w.shape == (I, H), f"expected weight of shape {(I, H)}, got {w.shape}"

    h2d = hidden_states.reshape(-1, I)
    r2d = input_tensor.reshape(-1, H)
    M = h2d.shape[0]

    # Ship the resident weight in the MXU dtype (halves VMEM + one-time weight DMA).
    if mxu_dtype is not None and jnp.dtype(w.dtype).itemsize > jnp.dtype(mxu_dtype).itemsize:
        w = w.astype(mxu_dtype)

    # Output dtype: don't silently narrow if the residual is wider than hidden_states.
    out_dtype = jnp.promote_types(hidden_states.dtype, input_tensor.dtype)

    h_bytes = jnp.dtype(h2d.dtype).itemsize
    r_bytes = jnp.dtype(r2d.dtype).itemsize
    w_bytes = jnp.dtype(w.dtype).itemsize
    o_bytes = jnp.dtype(out_dtype).itemsize
    mxu_bytes = jnp.dtype(w.dtype).itemsize

    # --- Row tile choice ---------------------------------------------------------
    # Big tile to amortize the ~0.35us per-grid-step cost; 8-row (sublane) aligned;
    # ensure >= 2 grid steps so "parallel" can shard across v7x's two TensorCores
    # (harmless on 1-TC v5e/v6e). No padding: ragged last block is masked by Pallas.
    tm = max(8, min(tm, _round_up(M, 8)))
    if M > 8:
        tm = min(tm, _round_up(-(-M // 2), 8))

    def _vmem_est(tile_m):
        return (
            2 * tile_m * I * h_bytes          # hidden_states tile x2 (double-buffered)
            + 2 * tile_m * H * r_bytes        # residual tile x2
            + 2 * tile_m * H * o_bytes        # output tile x2
            + I * H * w_bytes                 # resident weight (Buffered(1))
            + 3 * H * 4                       # bias / gamma / beta (f32)
            + tile_m * I * mxu_bytes          # in-kernel bf16 copy of the h tile
            + 6 * tile_m * H * 4              # f32 temporaries (y / centered / y_hat)
        )

    # --- Chip-aware VMEM ceiling ---------------------------------------------------
    try:
        vmem_cap = int(pltpu.get_tpu_info().vmem_capacity_bytes)
    except Exception:  # pragma: no cover - conservative fallback
        vmem_cap = 64 * 1024 * 1024
    # Leave ~8 MiB headroom for compiler scratch / DMA descriptors; never ask for more
    # than ~100 MiB even on 128 MiB parts (v5e/v6e), never less than 32 MiB.
    vmem_ceiling = min(max(vmem_cap - 8 * 1024 * 1024, 32 * 1024 * 1024), 100 * 1024 * 1024)

    # Shrink the tile until the (padded) estimate fits under the ceiling.
    while tm > 8 and int(_vmem_est(tm) * 1.15) > vmem_ceiling:
        tm = max(8, _round_up(tm // 2, 8))

    grid_m = -(-M // tm)  # pl.cdiv
    vmem_limit = int(min(max(int(_vmem_est(tm) * 1.25), 32 * 1024 * 1024), vmem_ceiling))

    # Resident (f32) parameter rows: cast once on the host, not per grid step.
    b2d = b.reshape(1, H).astype(jnp.float32)
    g2d = gamma.reshape(1, H).astype(jnp.float32)
    beta2d = beta.reshape(1, H).astype(jnp.float32)

    cost = pl.CostEstimate(
        flops=2 * M * I * H,
        transcendentals=M,  # one rsqrt per row
        bytes_accessed=(M * I * h_bytes + M * H * r_bytes + M * H * o_bytes
                        + I * H * w_bytes + 3 * H * 4),
    )

    kernel = functools.partial(_bert_output_kernel, eps=eps)

    out = pl.pallas_call(
        kernel,
        out_shape=jax.ShapeDtypeStruct((M, H), out_dtype),
        grid_spec=pltpu.PrefetchScalarGridSpec(
            num_scalar_prefetch=0,
            grid=(grid_m,),
            in_specs=[
                pl.BlockSpec((tm, I), lambda i: (i, 0)),   # hidden_states tile (streamed)
                pl.BlockSpec((tm, H), lambda i: (i, 0)),   # residual tile (streamed)
                pl.BlockSpec((I, H), lambda i: (0, 0),     # dense weight (resident, bf16)
                             pipeline_mode=pl.Buffered(1)),
                pl.BlockSpec((1, H), lambda i: (0, 0),     # dense bias
                             pipeline_mode=pl.Buffered(1)),
                pl.BlockSpec((1, H), lambda i: (0, 0),     # LN gamma
                             pipeline_mode=pl.Buffered(1)),
                pl.BlockSpec((1, H), lambda i: (0, 0),     # LN beta
                             pipeline_mode=pl.Buffered(1)),
            ],
            out_specs=pl.BlockSpec((tm, H), lambda i: (i, 0)),
        ),
        compiler_params=pltpu.CompilerParams(
            dimension_semantics=("parallel",),
            vmem_limit_bytes=vmem_limit,
        ),
        cost_estimate=cost,
    )(h2d, r2d, w, b2d, g2d, beta2d)

    return out.reshape(*lead_shape, H)


def _reference(hidden_states, input_tensor, w, b, gamma, beta, eps=1e-12):
    y = hidden_states.astype(jnp.float32) @ w.astype(jnp.float32) + b.astype(jnp.float32)
    y = y + input_tensor.astype(jnp.float32)
    mean = jnp.mean(y, axis=-1, keepdims=True)
    var = jnp.mean((y - mean) ** 2, axis=-1, keepdims=True)
    return (y - mean) / jnp.sqrt(var + eps) * gamma + beta


if __name__ == "__main__":
    # Small BERT-like config with a lane-dense hidden dim:
    # batch=2, seq=8, hidden=128, intermediate=256.
    batch, seq, hidden, intermediate = 2, 8, 128, 256

    key = jax.random.PRNGKey(0)
    k_h, k_x, k_w, k_b, k_g, k_beta = jax.random.split(key, 6)

    hidden_states = jax.random.normal(k_h, (batch, seq, intermediate), dtype=jnp.float32)
    input_tensor = jax.random.normal(k_x, (batch, seq, hidden), dtype=jnp.float32)

    # nn.Linear(intermediate, hidden) has torch weight (hidden, intermediate);
    # we store its transpose (intermediate, hidden) so the kernel does h @ W.
    w = 0.02 * jax.random.normal(k_w, (intermediate, hidden), dtype=jnp.float32)
    b = 0.01 * jax.random.normal(k_b, (hidden,), dtype=jnp.float32)
    gamma = 1.0 + 0.1 * jax.random.normal(k_g, (hidden,), dtype=jnp.float32)
    beta = 0.1 * jax.random.normal(k_beta, (hidden,), dtype=jnp.float32)

    out = bert_output(hidden_states, input_tensor, w, b, gamma, beta)
    out = jax.block_until_ready(out)

    ref = _reference(hidden_states, input_tensor, w, b, gamma, beta)
    assert out.shape == (batch, seq, hidden)
    # bf16 MXU operands (f32 accumulation) => bf16-class matmul accuracy; LayerNorm keeps
    # the absolute error in the few-e-3 range.
    assert jnp.allclose(out, ref, atol=1e-2, rtol=1e-2), (
        "mismatch vs reference, max abs diff = %r" % float(jnp.max(jnp.abs(out - ref)))
    )

    print("KERNEL_OK")
</pallas_src>

<mosaic_0001>
module attributes {stable_mosaic.version = 11 : i64} {
  func.func @_bert_output_kernel(%arg0: i32, %arg1: memref<8x256xf32, #tpu.memory_space<vmem>>, %arg2: memref<8x128xf32, #tpu.memory_space<vmem>>, %arg3: memref<256x128xbf16, #tpu.memory_space<vmem>>, %arg4: memref<1x128xf32, #tpu.memory_space<vmem>>, %arg5: memref<1x128xf32, #tpu.memory_space<vmem>>, %arg6: memref<1x128xf32, #tpu.memory_space<vmem>>, %arg7: memref<8x128xf32, #tpu.memory_space<vmem>>) attributes {dimension_semantics = [#tpu.dimension_semantics<parallel>], iteration_bounds = array<i64: 2>, scalar_prefetch = 0 : i64, scratch_operands = 0 : i64, tpu.core_type = #tpu.core_type<tc>, window_params = [{transform_indices = @transform_0, window_bounds = array<i64: 8, 256>}, {transform_indices = @transform_1, window_bounds = array<i64: 8, 128>}, {pipeline_mode = #tpu.pipeline_mode<synchronous>, transform_indices = @transform_2, window_bounds = array<i64: 256, 128>}, {pipeline_mode = #tpu.pipeline_mode<synchronous>, transform_indices = @transform_3, window_bounds = array<i64: 1, 128>}, {pipeline_mode = #tpu.pipeline_mode<synchronous>, transform_indices = @transform_4, window_bounds = array<i64: 1, 128>}, {pipeline_mode = #tpu.pipeline_mode<synchronous>, transform_indices = @transform_5, window_bounds = array<i64: 1, 128>}, {transform_indices = @transform_6, window_bounds = array<i64: 8, 128>}]} {
    %c0 = arith.constant 0 : index
    %c0_0 = arith.constant 0 : index
    %0 = vector.load %arg1[%c0, %c0_0] : memref<8x256xf32, #tpu.memory_space<vmem>>, vector<8x256xf32>
    %c0_1 = arith.constant 0 : index
    %c0_2 = arith.constant 0 : index
    %1 = vector.load %arg3[%c0_1, %c0_2] : memref<256x128xbf16, #tpu.memory_space<vmem>>, vector<256x128xbf16>
    %2 = arith.truncf %0 : vector<8x256xf32> to vector<8x256xbf16>
    %cst = arith.constant dense<0.000000e+00> : vector<8x128xf32>
    %3 = tpu.matmul %2, %1, %cst {dimension_numbers = #tpu.dot_dimension_numbers<[1], [0], [0], [1], [0, 0, 1, 1], [], []>} : vector<8x256xbf16>, vector<256x128xbf16>, vector<8x128xf32> -> vector<8x128xf32>
    %c0_3 = arith.constant 0 : index
    %c0_4 = arith.constant 0 : index
    %4 = vector.load %arg4[%c0_3, %c0_4] : memref<1x128xf32, #tpu.memory_space<vmem>>, vector<1x128xf32>
    %5 = vector.broadcast %4 : vector<1x128xf32> to vector<8x128xf32>
    %6 = arith.addf %3, %5 : vector<8x128xf32>
    %c0_5 = arith.constant 0 : index
    %c0_6 = arith.constant 0 : index
    %7 = vector.load %arg2[%c0_5, %c0_6] : memref<8x128xf32, #tpu.memory_space<vmem>>, vector<8x128xf32>
    %8 = arith.addf %6, %7 : vector<8x128xf32>
    %cst_7 = arith.constant dense<0.000000e+00> : vector<8xf32>
    %9 = vector.multi_reduction <add>, %8, %cst_7 [1] : vector<8x128xf32> to vector<8xf32>
    %10 = vector.shape_cast %9 : vector<8xf32> to vector<8x1xf32>
    %cst_8 = arith.constant 1.280000e+02 : f32
    %11 = vector.broadcast %cst_8 : f32 to vector<8x1xf32>
    %12 = arith.divf %10, %11 : vector<8x1xf32>
    %13 = vector.broadcast %12 : vector<8x1xf32> to vector<8x128xf32>
    %14 = arith.subf %8, %13 : vector<8x128xf32>
    %15 = arith.mulf %14, %14 : vector<8x128xf32>
    %cst_9 = arith.constant dense<0.000000e+00> : vector<8xf32>
    %16 = vector.multi_reduction <add>, %15, %cst_9 [1] : vector<8x128xf32> to vector<8xf32>
    %17 = vector.shape_cast %16 : vector<8xf32> to vector<8x1xf32>
    %cst_10 = arith.constant 1.280000e+02 : f32
    %18 = vector.broadcast %cst_10 : f32 to vector<8x1xf32>
    %19 = arith.divf %17, %18 : vector<8x1xf32>
    %cst_11 = arith.constant 9.99999996E-13 : f32
    %20 = vector.broadcast %cst_11 : f32 to vector<8x1xf32>
    %21 = arith.addf %19, %20 : vector<8x1xf32>
    %22 = math.rsqrt %21 : vector<8x1xf32>
    %23 = vector.broadcast %22 : vector<8x1xf32> to vector<8x128xf32>
    %24 = arith.mulf %14, %23 : vector<8x128xf32>
    %c0_12 = arith.constant 0 : index
    %c0_13 = arith.constant 0 : index
    %25 = vector.load %arg5[%c0_12, %c0_13] : memref<1x128xf32, #tpu.memory_space<vmem>>, vector<1x128xf32>
    %26 = vector.broadcast %25 : vector<1x128xf32> to vector<8x128xf32>
    %27 = arith.mulf %24, %26 : vector<8x128xf32>
    %c0_14 = arith.constant 0 : index
    %c0_15 = arith.constant 0 : index
    %28 = vector.load %arg6[%c0_14, %c0_15] : memref<1x128xf32, #tpu.memory_space<vmem>>, vector<1x128xf32>
    %29 = vector.broadcast %28 : vector<1x128xf32> to vector<8x128xf32>
    %30 = arith.addf %27, %29 : vector<8x128xf32>
    %c0_16 = arith.constant 0 : index
    %c0_17 = arith.constant 0 : index
    %31 = vector.load %arg7[%c0_16, %c0_17] : memref<8x128xf32, #tpu.memory_space<vmem>>, vector<8x128xf32>
    tpu.vector_store %arg7[%c0_16, %c0_17], %30 {strides = array<i32>} : memref<8x128xf32, #tpu.memory_space<vmem>>, vector<8x128xf32>,
    return
  }
  func.func @transform_0(%arg0: i32) -> (i32, i32) {
    %c0_i32 = arith.constant 0 : i32
    %c0_i32_0 = arith.constant 0 : i32
    return %arg0, %c0_i32 : i32, i32
  }
  func.func @transform_1(%arg0: i32) -> (i32, i32) {
    %c0_i32 = arith.constant 0 : i32
    %c0_i32_0 = arith.constant 0 : i32
    return %arg0, %c0_i32 : i32, i32
  }
  func.func @transform_2(%arg0: i32) -> (i32, i32) {
    %c0_i32 = arith.constant 0 : i32
    %c0_i32_0 = arith.constant 0 : i32
    %c0_i32_1 = arith.constant 0 : i32
    return %c0_i32, %c0_i32_0 : i32, i32
  }
  func.func @transform_3(%arg0: i32) -> (i32, i32) {
    %c0_i32 = arith.constant 0 : i32
    %c0_i32_0 = arith.constant 0 : i32
    %c0_i32_1 = arith.constant 0 : i32
    return %c0_i32, %c0_i32_0 : i32, i32
  }
  func.func @transform_4(%arg0: i32) -> (i32, i32) {
    %c0_i32 = arith.constant 0 : i32
    %c0_i32_0 = arith.constant 0 : i32
    %c0_i32_1 = arith.constant 0 : i32
    return %c0_i32, %c0_i32_0 : i32, i32
  }
  func.func @transform_5(%arg0: i32) -> (i32, i32) {
    %c0_i32 = arith.constant 0 : i32
    %c0_i32_0 = arith.constant 0 : i32
    %c0_i32_1 = arith.constant 0 : i32
    return %c0_i32, %c0_i32_0 : i32, i32
  }
  func.func @transform_6(%arg0: i32) -> (i32, i32) {
    %c0_i32 = arith.constant 0 : i32
    %c0_i32_0 = arith.constant 0 : i32
    return %arg0, %c0_i32 : i32, i32
  }
}

</mosaic_0001>

<bundles_post_ra>
// kernel: tpu_custom_call.1
= control target key start
LH: loop header
LB: loop body
LE: loop exit
PB: predicated region body
PF: predicated region fallthrough
CT: control target
= control target key end

     0   :  { %s1213_s0 = inlined_call_operand.hbm [shape: f32[16,256], index: 0, kind: input, shape index: {}]   ;;  %s1214_s1 = inlined_call_operand.hbm [shape: f32[16,128], index: 1, kind: input, shape index: {}]   ;;  %s1215_s2 = inlined_call_operand.hbm [shape: bf16[256,128], index: 2, kind: input, shape index: {}]   ;;  %s1216_s3 = inlined_call_operand.vmem [shape: f32[1,128], index: 3, kind: input, shape index: {}]   ;;  %s1217_s4 = inlined_call_operand.vmem [shape: f32[1,128], index: 4, kind: input, shape index: {}]   ;;  %s1218_s5 = inlined_call_operand.vmem [shape: f32[1,128], index: 5, kind: input, shape index: {}]   ;;  %s1219_s6 = inlined_call_operand.hbm [shape: f32[16,128], index: 6, kind: output, shape index: {}]  }
   0x1   :  { %1224 = sst [smem:[#allocation17_spill]] %s1215_s2 }
   0x2   :  { %11 = vsyncpa [#allocation3], 0 }
   0x3   :  { %13 = vsyncpa [#allocation3 + $0x1], 0 }
   0x4   :  { %14 = vsyncpa [#allocation6], 0 }
   0x5   :  { %16 = vsyncpa [#allocation6 + $0x1], 0 }
   0x6   :  { %17 = vsyncpa [#allocation4], 0 }
   0x7   :  { %19 = vsyncpa [#allocation4 + $0x1], 0  ;;  %s1021_s21 = smov 0   ;;  %s1023_s22 = smov 0  }
   0x8   :  { %s1025_s23 = smov 0   ;;  %s1027_s24 = smov 0  }
   0x9 LB: > { %1225 = sst [smem:[#allocation13_spill]] %s976_s23  ;;  %s1045_s28 = sadd.s32 4294967295, %s980_s24   ;;  %s980_s24 = sphi %s1027_s24, %s1238_s24   ;;  %s976_s23 = sphi %s1025_s23, %s1240_s23   ;;  %s972_s22 = sphi %s1023_s22, %s1242_s22   ;;  %s968_s21 = sphi %s1021_s21, %s1241_s21  }
   0xa   : > { %s1226_s2 = sld [smem:[#allocation17_spill]]  ;;  %p646_p0 = scmp.ge.s32.totalorder %s980_s24, 1 }
   0xb   : > { %p46_p1 = scmp.eq.s32.totalorder %s1045_s28, 0  ;;  %p192_p2 = scmp.lt.s32.totalorder %s980_s24, 3 }
   0xc   : > { %s982_s30 = smov [#allocation7]   ;;  %s983_s8 = smov 64  }
   0xd   : > { %p1050_p3 = pnand %p646_p0, %p192_p2  ;;  %s205_s7 = sshll.u32 %s982_s30, 4  ;;  %s206_s7 = int_to_ptr.vmem [resolvable:$true] %s205_s7 }
   0xe   : > { %s984_s9 = smov 4   ;;  %s645_s10 = sadd.s32 4294967294, %s980_s24  }
   0xf   : > { %p754_p4 = pneg %p1050_p3  ;;  %s1061_s11 = sadd.s32 1, %s980_s24  }
  0x10   : > { %s203_s27 = sshll.u32 %s1226_s2, 4  ;;  %1228 = sst [smem:[#allocation14_spill]] %s1061_s11  ;;  %s204_s27 = int_to_ptr.hbm [resolvable:$true] %s203_s27 }
  0x11   : > { %p755_p6 = pnand %p754_p4, %p46_p1  ;;  %s32_s12 = sadd.s32 1, %s976_s23 }
  0x12   : > { %s29_s13 = ssub.s32 %s980_s24, %s1061_s11  ;;  %p39_p7 = scmp.ne.s32.totalorder %s976_s23, %s972_s22 }
  0x13   : > { %757 = dma.hbm_to_vmem [thread:$0]  (!%p755_p6), %s204_s27, 2048, %s206_s7, [#allocation6], %s983_s8, %s983_s8, %s984_s9  }
  0x14   : > { %p30_p8 = scmp.eq.s32.totalorder %s29_s13, 0  ;;  %p40_p9 = scmp.eq.s32.totalorder %s980_s24, 0 }
  0x15   : > { %p45_p10 = scmp.ne.s32.totalorder %s972_s22, %s968_s21  ;;  %p179_p11 = scmp.eq.s32.totalorder %s1045_s28, 1 }
  0x16   : > { %s1073_s14 = scalar_select %p30_p8, %s976_s23, %s32_s12  }
  0x17   : > { %p1075_p12 = por %p40_p9, %p39_p7  ;;  %p1081_p13 = por %p46_p1, %p45_p10 }
  0x18   : > { %1229 = sst [smem:[#allocation15_spill]] %s1073_s14  ;;  %p1085_p0 = por %p179_p11, %p39_p7 }
  0x19   : > { %p185_p2 = scmp.eq.s32.totalorder %s645_s10, 1  ;;  %p770_p4 = scmp.lt.s32.totalorder %s980_s24, 2 }
  0x1a   : > { %s1091_s18 = sand.u32 1, %s976_s23   ;;  %s727_s25 = sshll.u32 %s980_s24, 4 }
  0x1b   : > { %p1093_p6 = por %p185_p2, %p45_p10  ;;  %s649_s20 = sshll.u32 %s1091_s18, 4 }
  0x1c   : > { %s237_s30 = scalar_lea.hbm %s1213_s0, %s727_s25  ;;  %s232_s8 = scalar_lea.vmem [#allocation2], %s649_s20 }
  0x1d   : > { %s1233_s19 = scalar_select %p1093_p6, 1, 0 }
  0x1e   : > { %s239_s7 = sshll.u32 %s237_s30, 4  ;;  %s241_s9 = sshll.u32 %s232_s8, 4  ;;  %s240_s7 = int_to_ptr.hbm [resolvable:$true] %s239_s7  ;;  %s242_s9 = int_to_ptr.vmem [resolvable:$true] %s241_s9 }
  0x1f   : > { %1234 = sst [smem:[#allocation16_spill]] %s1233_s19  ;;  %p1104_p7 = pnand %p770_p4, %p1075_p12 }
  0x20   : > { %s248_s12 = sand.u32 1, %s980_s24   ;;  %s652_s13 = sshll.u32 %s1091_s18, 3 }
  0x21   : > { %s229_s2 = scalar_lea.sflag [#allocation3], %s1091_s18  ;;  %s846_s14 = sshra.s32 %s240_s7, 4  ;;  %s847_s14 = int_to_ptr.hbm [resolvable:$true] %s846_s14 }
  0x22   : > { %s848_s23 = scalar_lea.hbm %s847_s14, 16  ;;  %p850_p9 = pneg %p1104_p7 }
  0x23   : > { %p849_p8 = scmp.ne.s32.totalorder %s847_s14, %s848_s23  ;;  %s853_s25 = scalar_lea.hbm %s1213_s0, 32 }
  0x24   : > { %p854_p12 = scmp.lt.s32.totalorder %s847_s14, %s1213_s0  ;;  %p855_p2 = scmp.lt.s32.totalorder %s853_s25, %s848_s23 }
  0x25   : > { %p851_p10 = pnand %p850_p9, %p849_p8 }
  0x26   : > { %p856_p4 = por %p855_p2, %p854_p12 }
  0x27   : > { %p852_p11 = pneg %p851_p10 }
  0x29   : > { %p857_p5 = pnand %p856_p4, %p852_p11 }
  0x2b   : > { %860 = shalt.err (!%p857_p5)
}
  0x2c   : > { %761 = dma.hbm_to_vmem [thread:$0]  (!%p1104_p7), %s240_s7, 256, %s242_s9, %s229_s2  }
  0x2d   : > { %s653_s18 = sshll.u32 %s980_s24, 3  ;;  %s252_s30 = scalar_lea.vmem [#allocation5], %s652_s13 }
  0x2e   : > { %s260_s8 = sshll.u32 %s252_s30, 4  ;;  %s256_s15 = scalar_lea.hbm %s1214_s1, %s653_s18  ;;  %s261_s8 = int_to_ptr.vmem [resolvable:$true] %s260_s8 }
  0x2f   : > { %s258_s20 = sshll.u32 %s256_s15, 4  ;;  %s249_s14 = scalar_lea.sflag [#allocation6], %s248_s12  ;;  %s259_s20 = int_to_ptr.hbm [resolvable:$true] %s258_s20 }
  0x30   : > { %s876_s23 = sshra.s32 %s259_s20, 4  ;;  %s883_s9 = scalar_lea.hbm %s1214_s1, 16  ;;  %s877_s23 = int_to_ptr.hbm [resolvable:$true] %s876_s23 }
  0x31   : > { %s878_s25 = scalar_lea.hbm %s877_s23, 8  ;;  %p884_p11 = scmp.lt.s32.totalorder %s877_s23, %s1214_s1 }
  0x32   : > { %p879_p5 = scmp.ne.s32.totalorder %s877_s23, %s878_s25  ;;  %p885_p12 = scmp.lt.s32.totalorder %s883_s9, %s878_s25 }
  0x34   : > { %p881_p8 = pnand %p879_p5, %p850_p9  ;;  %p886_p2 = por %p885_p12, %p884_p11 }
  0x36   : > { %p882_p10 = pneg %p881_p8 }
  0x38   : > { %p887_p4 = pnand %p886_p2, %p882_p10 }
  0x3a   : > { %890 = shalt.err (!%p887_p4)
}
  0x3b   : > { %764 = dma.hbm_to_vmem [thread:$0]  (!%p1104_p7), %s259_s20, 128, %s261_s8, %s249_s14  }
  0x3c   : > { %269 = sbr.rel (%p1050_p3) target bundleno = 504 (0x1f8), region = 44  ;;  %s1142_s11 = sand.u32 (!%p1050_p3), 1, %s972_s22  }
  0x3d   : > { %s655_s19 = sshll.u32 (!%p1050_p3), %s1142_s11, 4  ;;  %s272_s12 = scalar_lea.sflag (!%p1050_p3), [#allocation3], %s1142_s11 }
  0x3e   : > { %s1146_s27 = scalar_lea.vmem (!%p1050_p3), [#allocation2], %s655_s19 }
  0x41   : > { %951 = dma.done.wait (%p1081_p13), %s272_s12, 256  }
  0x42   : > { %953 = vsyncadd (%p1081_p13), %s272_s12, 4294967040  ;;  %s281_s29 = sand.u32 1, %s1045_s28   ;;  %s656_s10 = sshll.u32 %s1142_s11, 3 }
  0x43   : > { %s282_s18 = scalar_lea.sflag [#allocation6], %s281_s29  ;;  %s1156_s30 = scalar_lea.vmem [#allocation5], %s656_s10 }
  0x44   : > { %955 = dma.done.wait (%p1081_p13), %s282_s18, 128  }
  0x45   : > { %957 = vsyncadd (%p1081_p13), %s282_s18, 4294967168 }
  0x46   : > { %959 = dma.done.wait (%p46_p1), [#allocation6], 2048  }
  0x47   : > { %961 = vsyncadd (%p46_p1), [#allocation6], 4294965248  ;;  %v735_v0 = vld [vmem:[#allocation7 + $0x38] sm:$0xff]  ;;  %v734_v2 = vld [vmem:[#allocation7 + $0x30] sm:$0xff]  ;;  %v985_v29 = vmov 128.0   ;;  %s724_s15 = sshll.u32 %s1045_s28, 3 }
  0x48   : > { %v743_v1 = vld [vmem:[#allocation7 + $0x78] sm:$0xff]  ;;  %461 = vmatpush.bf16.msra.mxu0 %v735_v0  ;;  %v742_v3 = vld [vmem:[#allocation7 + $0x70] sm:$0xff]  ;;  %v733_v4 = vld [vmem:[#allocation7 + $0x28] sm:$0xff]  ;;  %812 = vrcp.f32 %v985_v29  ;;  %s538_s2 = scalar_lea.hbm %s1219_s6, %s724_s15  ;;  %s324_s28 = scalar_lea.vmem [#allocation8], %s656_s10 }
  0x49   : > { %474 = vmatpush.bf16.msra.mxu1 %v743_v1  ;;  %v741_v5 = vld [vmem:[#allocation7 + $0x68] sm:$0xff]  ;;  %v732_v6 = vld [vmem:[#allocation7 + $0x20] sm:$0xff]  ;;  %v731_v8 = vld [vmem:[#allocation7 + $0x18] sm:$0xff]  ;;  %s540_s13 = sshll.u32 %s324_s28, 4  ;;  %s542_s26 = sshll.u32 %s538_s2, 4  ;;  %s541_s13 = int_to_ptr.vmem [resolvable:$true] %s540_s13  ;;  %s543_s26 = int_to_ptr.hbm [resolvable:$true] %s542_s26 }
  0x4a   : > { %v740_v7 = vld [vmem:[#allocation7 + $0x60] sm:$0xff]  ;;  %v739_v9 = vld [vmem:[#allocation7 + $0x58] sm:$0xff]  ;;  %v730_v10 = vld [vmem:[#allocation7 + $0x10] sm:$0xff]  ;;  %s528_s19 = scalar_lea.sflag [#allocation4], %s1142_s11  ;;  %s920_s12 = sshra.s32 %s543_s26, 4  ;;  %s921_s12 = int_to_ptr.hbm [resolvable:$true] %s920_s12 }
  0x4b   : > { %v738_v11 = vld [vmem:[#allocation7 + $0x50] sm:$0xff]  ;;  %v729_v12 = vld [vmem:[#allocation7 + $0x8] sm:$0xff]  ;;  %v728_v14 = vld [vmem:[#allocation7] sm:$0xff]  ;;  %p927_p7 = scmp.lt.s32.totalorder %s921_s12, %s1219_s6 }
  0x4c   : > { %462 = vmatpush.bf16.msra.mxu0 %v734_v2  ;;  %v737_v13 = vld [vmem:[#allocation7 + $0x48] sm:$0xff]  ;;  %v736_v15 = vld [vmem:[#allocation7 + $0x40] sm:$0xff]  ;;  %v809_v20 = vld [vmem:[%s1216_s3] ss:$0 sm:$0xff] }
  0x4d   : > { %475 = vmatpush.bf16.msra.mxu1 %v742_v3  ;;  %v325_v16 = vld [vmem:[%s1146_s27] sm:$0xff]  ;;  %v326_v17 = vld [vmem:[%s1146_s27 + $0x8] sm:$0xff]  ;;  %s922_s27 = scalar_lea.hbm %s921_s12, 8 }
  0x4e   : > { %v359_v18 = vpack.c.bf16 %v325_v16, %v325_v16  ;;  %v360_v19 = vpack.c.bf16 %v326_v17, %v326_v17  ;;  %v487_v24 = vld [vmem:[%s1156_s30] sm:$0xff]  ;;  %v813_v30 = vpop.eup %812  ;;  %p923_p1 = scmp.ne.s32.totalorder %s921_s12, %s922_s27  ;;  %s926_s30 = scalar_lea.hbm %s1219_s6, 16 }
  0x4f   : > { %v492_v31 = vmul.f32 128.0, %v813_v30  ;;  %vm496_vm0 = vweird.f32 %v813_v30  ;;  %v810_v49 = vld [vmem:[%s1217_s4] ss:$0 sm:$0xff]  ;;  %p928_p9 = scmp.lt.s32.totalorder %s926_s30, %s922_s27 }
  0x50   : > { %463 = vmatpush.bf16.msra.mxu0 %v733_v4  ;;  %v811_v52 = vld [vmem:[%s1218_s5] ss:$0 sm:$0xff]  ;;  %p924_p3 = pnand %p923_p1, %p1085_p0 }
  0x51   : > { %476 = vmatpush.bf16.msra.mxu1 %v741_v5  ;;  %v493_v32 = vsub.f32 1.0, %v492_v31  ;;  %p929_p5 = por %p928_p9, %p927_p7 }
  0x52   : > { %p925_p13 = pneg %p924_p3 }
  0x53   : > { %v494_v33 = vmul.f32 %v813_v30, %v493_v32 }
  0x54   : > { %464 = vmatpush.bf16.msra.mxu0 %v732_v6  ;;  %p930_p8 = pnand %p929_p5, %p925_p13 }
  0x55   : > { %477 = vmatpush.bf16.msra.mxu1 %v740_v7  ;;  %v495_v34 = vadd.f32 %v813_v30, %v494_v33 }
  0x57   : > { %v497_v35 = vsel %vm496_vm0, %v813_v30, %v495_v34 }
  0x58   : > { %465 = vmatpush.bf16.msra.mxu0 %v731_v8 }
  0x59   : > { %478 = vmatpush.bf16.msra.mxu1 %v739_v9 }
  0x5c   : > { %466 = vmatpush.bf16.msra.mxu0 %v730_v10 }
  0x5d   : > { %479 = vmatpush.bf16.msra.mxu1 %v738_v11 }
  0x60   : > { %467 = vmatpush.bf16.msra.mxu0 %v729_v12 }
  0x61   : > { %480 = vmatpush.bf16.msra.mxu1 %v737_v13 }
  0x64   : > { %468 = vmatpush.bf16.msra.mxu0 %v728_v14 }
  0x65   : > { %481 = vmatpush.bf16.msra.mxu1 %v736_v15 }
  0x67   : > { %469 = vmatmul.bf16.vlgmr.msra.gmra.mxu0 %v359_v18 }
  0x68   : > { %482 = vmatmul.bf16.vlgmr.msra.gmra.mxu1 %v360_v19 }
  0xe4   : > { %v470_v21 = vpop.f32.mrf.mxu0 }
  0xe5   : > { %v483_v22 = vpop.f32.mrf.mxu1  ;;  %v471_v23 = vadd.f32 %v809_v20, %v470_v21 }
  0xe7   : > { %v484_v25 = vadd.f32 %v483_v22, %v471_v23 }
  0xe9   : > { %v488_v26 = vadd.f32 %v487_v24, %v484_v25 }
  0xeb   : > { %489 = vadd.xlane.f32.xlu0 %v488_v26 }
  0xec   : > { %v472_v27 = vpop.f32.mrf.mxu0 }
  0xed   : > { %v485_v28 = vpop.f32.mrf.mxu1 }
 0x15e   : > { %v490_v36 = vpop.xlane.xlu0 %489 }
 0x15f   : > { %v498_v37 = vmul.f32 %v497_v35, %v490_v36 }
 0x161   : > { %v499_v38 = vsub.f32 %v488_v26, %v498_v37 }
 0x163   : > { %v500_v39 = vmul.f32 %v499_v38, %v499_v38 }
 0x165   : > { %501 = vadd.xlane.f32.xlu0 %v500_v39 }
 0x1d8   : > { %v502_v40 = vpop.xlane.xlu0 %501 }
 0x1d9   : > { %v503_v41 = vmul.f32 %v502_v40, %v497_v35 }
 0x1db   : > { %v504_v42 = vadd.f32 1e-12, %v503_v41 }
 0x1dd   : > { %814 = vrsqrt.f32 %v504_v42  ;;  %vm511_vm2 = vweird.f32 %v504_v42 }
 0x1e3   : > { %v815_v43 = vpop.eup %814 }
 0x1e4   : > { %v506_v44 = vmul.f32 %v815_v43, %v504_v42  ;;  %vm512_vm1 = vweird.f32 %v815_v43 }
 0x1e5   : > { %vm513_vm3 = vmor %vm511_vm2, %vm512_vm1 }
 0x1e6   : > { %v507_v45 = vmul.f32 %v815_v43, %v506_v44 }
 0x1e8   : > { %v508_v46 = vmul.f32 0.5, %v507_v45 }
 0x1ea   : > { %v509_v47 = vsub.f32 1.5, %v508_v46 }
 0x1ec   : > { %v510_v48 = vmul.f32 %v815_v43, %v509_v47 }
 0x1ee   : > { %v514_v50 = vsel %vm513_vm3, %v815_v43, %v510_v48 }
 0x1ef   : > { %v515_v51 = vmul.f32 %v514_v50, %v499_v38 }
 0x1f1   : > { %v520_v53 = vmul.f32 %v810_v49, %v515_v51 }
 0x1f3   : > { %v525_v54 = vadd.f32 %v811_v52, %v520_v53 }
 0x1f5   : > { %526 = vst [vmem:[%s324_s28] sm:$0xff] %v525_v54 }
 0x1f6   : > { %933 = shalt.err (!%p930_p8)
}
 0x1f7   : > { %752 = dma.vmem_to_hbm [thread:$0]  (%p1085_p0), %s541_s13, 128, %s543_s26, %s528_s19  }
 0x1f8 PF: > { %s554_s8 = sand.u32 1, %s968_s21   ;;  %p1237_p10 = scmp.ge.s32.totalorder %s980_s24, 2 }
 0x1f9   : > { %s555_s15 = scalar_lea.sflag [#allocation4], %s554_s8 }
 0x1fa   : > { %p766_p11 = pnand %p1237_p10, %p1093_p6 }
 0x1fc   : > { %p767_p12 = pneg %p766_p11 }
 0x1fe   : > { %963 = dma.done.wait (%p767_p12), %s555_s15, 128  }
 0x1ff   : > { %965 = vsyncadd (%p767_p12), %s555_s15, 4294967168  ;;  %s1238_s24 = sld [smem:[#allocation14_spill]]  ;;  %s1241_s21 = smov %s972_s22 }
 0x200   : > { %s1239_s20 = sld [smem:[#allocation13_spill]] }
 0x201   : > { %s1240_s23 = sld [smem:[#allocation15_spill]] }
 0x205   : > { %p22_p2 = scmp.ge.s32.totalorder %s1238_s24, 4  }
 0x206   : > { %s1242_s22 = smov %s1239_s20 }
 0x207   :  { %24 = sbr.rel (!%p22_p2) target bundleno = 9 (0x9), region = 106 }
 0x20c   :  { %561 = vsyncpa [#allocation3], 1 }
 0x20d   :  { %563 = vsyncpa [#allocation3 + $0x1], 1 }
 0x20e   :  { %564 = vsyncpa [#allocation6], 1 }
 0x20f   :  { %566 = vsyncpa [#allocation6 + $0x1], 1 }
 0x210   :  { %567 = vsyncpa [#allocation4], 1 }
 0x211   :  { %569 = vsyncpa [#allocation4 + $0x1], 1 }

</bundles_post_ra>
